<compile_context>
chip_gen: v7x
topology: tpu7x:2x2x1
jax: 0.10.0
libtpu: 0.0.40
codegen_flags: <defaults>
</compile_context>

<pallas_src>
import functools
import math

import jax
import jax.numpy as jnp
from jax import lax
from jax.experimental import pallas as pl
from jax.experimental.pallas import tpu as pltpu


def _num_tensorcores():
    """Best-effort TensorCores-per-chip (v7x: 2, v5e/v6e: 1). Falls back to 1."""
    try:
        info = pltpu.get_tpu_info()
        for name in ("num_cores", "core_count", "num_tensorcores",
                     "tensorcores_per_chip", "num_tensor_cores"):
            n = getattr(info, name, None)
            if isinstance(n, int) and n > 0:
                return n
    except Exception:
        pass
    try:
        n = getattr(jax.devices()[0], "num_cores", None)
        if isinstance(n, int) and n > 0:
            return n
    except Exception:
        pass
    return 1


def _attn_kernel(q_ref, k_ref, v_ref, mask_ref, o_ref, *, bp, d):
    # q_ref/k_ref/v_ref: (BP, S, D)   mask_ref: (S, S)   o_ref: (S, BP*D)
    scale = 1.0 / math.sqrt(d)
    m = mask_ref[...]                              # (S, S), f32 additive mask

    outs = []
    for b in range(bp):                            # static unroll (bp is tiny)
        # Fold the scale into q (S*D elems), then feed the MXU bf16 operands.
        q = (q_ref[b] * scale).astype(jnp.bfloat16)     # (S, D)
        k = k_ref[b].astype(jnp.bfloat16)               # (S, D)
        v = v_ref[b].astype(jnp.bfloat16)               # (S, D)

        # q @ k^T without materializing a transpose: contract on D directly.
        s = lax.dot_general(
            q, k,
            dimension_numbers=(((1,), (1,)), ((), ())),
            preferred_element_type=jnp.float32,
        ) + m                                           # (S, S), f32

        # Numerically-stable softmax along the KV axis, all in f32.
        # (mask uses large-finite -1e9 sentinels, so s - s_max never NaNs.)
        s_max = jnp.max(s, axis=-1, keepdims=True)
        p = jnp.exp(s - s_max)
        denom = jnp.sum(p, axis=-1, keepdims=True)
        w = p * pl.reciprocal(denom, approx=True)       # EUP slot

        # attn_weight @ v2  (bf16 MXU, f32 accumulate).  NOTE: softmax weights
        # are deliberately truncated to bf16 for the MXU input.
        outs.append(jnp.dot(w.astype(jnp.bfloat16), v,
                            preferred_element_type=jnp.float32))

    # One unmasked, lane-dense store instead of per-batch masked stores.
    out = outs[0] if bp == 1 else jnp.concatenate(outs, axis=-1)
    o_ref[...] = out.astype(o_ref.dtype)


def attention(q, k2, v2, mask, *, batches_per_step=None, num_cores=None):
    """softmax(q @ k2^T / sqrt(D) + mask, axis=-1) @ v2  on TPU via Pallas."""
    B, S, D = q.shape
    assert k2.shape == (B, S, D) and v2.shape == (B, S, D)
    assert mask.shape == (1, S, S)

    if num_cores is None:
        num_cores = _num_tensorcores()
    if batches_per_step is None:
        if num_cores >= 2 and B >= 2:
            batches_per_step = 1          # shard batches across TCs (v7x)
        elif B % 2 == 0:
            batches_per_step = 2          # fused, 128-lane output (v5e/v6e)
        else:
            batches_per_step = 1
    BP = batches_per_step
    assert B % BP == 0, "batches_per_step must divide B"

    mask_f32 = mask.astype(jnp.float32)   # (1, S, S); no padding needed

    kernel = functools.partial(_attn_kernel, bp=BP, d=D)

    if BP == 1:
        out_shape = jax.ShapeDtypeStruct((B, S, D), q.dtype)
        out_spec = pl.BlockSpec((pl.Squeezed(), S, D), lambda i: (i, 0, 0))
    else:
        out_shape = jax.ShapeDtypeStruct((B // BP, S, BP * D), q.dtype)
        out_spec = pl.BlockSpec((pl.Squeezed(), S, BP * D), lambda i: (i, 0, 0))

    out = pl.pallas_call(
        kernel,
        out_shape=out_shape,
        grid_spec=pltpu.PrefetchScalarGridSpec(
            num_scalar_prefetch=0,
            grid=(B // BP,),
            in_specs=[
                pl.BlockSpec((BP, S, D), lambda i: (i, 0, 0)),              # q
                pl.BlockSpec((BP, S, D), lambda i: (i, 0, 0)),              # k2
                pl.BlockSpec((BP, S, D), lambda i: (i, 0, 0)),              # v2
                # Constant index_map -> mask stays resident.  For large S
                # consider pipeline_mode=pl.Buffered(1) / bf16 mask to cut
                # its VMEM/DMA cost (irrelevant at S=56).
                pl.BlockSpec((pl.Squeezed(), S, S), lambda i: (0, 0, 0)),   # mask
            ],
            out_specs=out_spec,
        ),
        compiler_params=pltpu.CompilerParams(
            dimension_semantics=("parallel",)),
    )(q, k2, v2, mask_f32)

    if BP > 1:
        # (B//BP, S, BP*D) -> (B, S, D)   (wrapper-side layout plumbing only)
        out = out.reshape(B // BP, S, BP, D).transpose(0, 2, 1, 3).reshape(B, S, D)
    return out
    # TODO(synk): for S >> 128, switch to a KV-tiled online-softmax (flash)
    # structure: mask the ragged KV tail in-kernel (broadcasted_iota >= S)
    # instead of padding K/V in HBM, and size tiles against v7x's 64 MiB VMEM
    # (<=512-row Q tiles, explicit vmem_limit_bytes).  If this attention is
    # called per-head/per-layer, fuse heads into the grid of one pallas_call
    # to amortize launch/per-step overhead on single-TC v5e/v6e.


def attention_ref(q, k2, v2, mask):
    # Pure-JAX reference for correctness checking.
    d = q.shape[-1]
    s = jnp.einsum("bqd,bkd->bqk", q, k2) / math.sqrt(d) + mask
    w = jax.nn.softmax(s, axis=-1)
    return jnp.einsum("bqk,bkd->bqd", w, v2)


if __name__ == "__main__":
    # Shapes consistent with the module's (1, 56, 56) mask convention.
    B, S, D = 2, 56, 64
    key = jax.random.PRNGKey(0)
    kq, kk, kv, km = jax.random.split(key, 4)

    q = jax.random.normal(kq, (B, S, D), dtype=jnp.float32)
    k2 = jax.random.normal(kk, (B, S, D), dtype=jnp.float32)
    v2 = jax.random.normal(kv, (B, S, D), dtype=jnp.float32)
    # additive mask: ~30% of positions masked out with -1e9, rest 0
    mask = jnp.where(jax.random.uniform(km, (1, S, S)) > 0.7,
                     jnp.float32(-1e9), jnp.float32(0.0))

    out = jax.block_until_ready(attention(q, k2, v2, mask))

    ref = attention_ref(q, k2, v2, mask)
    assert out.shape == (B, S, D)
    # tolerance loosened for bf16 MXU operands + approx (EUP) reciprocal
    assert jnp.allclose(out, ref, atol=2e-2, rtol=2e-2), "mismatch vs reference"

    print("KERNEL_OK")
</pallas_src>

<mosaic_0001>
module attributes {stable_mosaic.version = 11 : i64} {
  func.func @_attn_kernel(%arg0: i32, %arg1: memref<2x56x64xf32, #tpu.memory_space<vmem>>, %arg2: memref<2x56x64xf32, #tpu.memory_space<vmem>>, %arg3: memref<2x56x64xf32, #tpu.memory_space<vmem>>, %arg4: memref<1x56x56xf32, #tpu.memory_space<vmem>>, %arg5: memref<1x56x128xf32, #tpu.memory_space<vmem>>) attributes {dimension_semantics = [#tpu.dimension_semantics<parallel>], iteration_bounds = array<i64: 1>, scalar_prefetch = 0 : i64, scratch_operands = 0 : i64, tpu.core_type = #tpu.core_type<tc>, window_params = [{transform_indices = @transform_0, window_bounds = array<i64: 2, 56, 64>}, {transform_indices = @transform_1, window_bounds = array<i64: 2, 56, 64>}, {transform_indices = @transform_2, window_bounds = array<i64: 2, 56, 64>}, {pipeline_mode = #tpu.pipeline_mode<synchronous>, transform_indices = @transform_3, window_bounds = array<i64: 1, 56, 56>}, {transform_indices = @transform_4, window_bounds = array<i64: 1, 56, 128>}]} {
    %c0 = arith.constant 0 : index
    %c0_0 = arith.constant 0 : index
    %c0_1 = arith.constant 0 : index
    %0 = vector.load %arg4[%c0, %c0_0, %c0_1] : memref<1x56x56xf32, #tpu.memory_space<vmem>>, vector<1x56x56xf32>
    %1 = vector.shape_cast %0 : vector<1x56x56xf32> to vector<56x56xf32>
    %c0_2 = arith.constant 0 : index
    %c0_3 = arith.constant 0 : index
    %c0_4 = arith.constant 0 : index
    %2 = vector.load %arg1[%c0_2, %c0_3, %c0_4] : memref<2x56x64xf32, #tpu.memory_space<vmem>>, vector<1x56x64xf32>
    %3 = vector.shape_cast %2 : vector<1x56x64xf32> to vector<56x64xf32>
    %cst = arith.constant 1.250000e-01 : f32
    %4 = vector.broadcast %cst : f32 to vector<56x64xf32>
    %5 = arith.mulf %3, %4 : vector<56x64xf32>
    %6 = arith.truncf %5 : vector<56x64xf32> to vector<56x64xbf16>
    %c0_5 = arith.constant 0 : index
    %c0_6 = arith.constant 0 : index
    %c0_7 = arith.constant 0 : index
    %7 = vector.load %arg2[%c0_5, %c0_6, %c0_7] : memref<2x56x64xf32, #tpu.memory_space<vmem>>, vector<1x56x64xf32>
    %8 = vector.shape_cast %7 : vector<1x56x64xf32> to vector<56x64xf32>
    %9 = arith.truncf %8 : vector<56x64xf32> to vector<56x64xbf16>
    %c0_8 = arith.constant 0 : index
    %c0_9 = arith.constant 0 : index
    %c0_10 = arith.constant 0 : index
    %10 = vector.load %arg3[%c0_8, %c0_9, %c0_10] : memref<2x56x64xf32, #tpu.memory_space<vmem>>, vector<1x56x64xf32>
    %11 = vector.shape_cast %10 : vector<1x56x64xf32> to vector<56x64xf32>
    %12 = arith.truncf %11 : vector<56x64xf32> to vector<56x64xbf16>
    %cst_11 = arith.constant dense<0.000000e+00> : vector<56x56xf32>
    %13 = tpu.matmul %6, %9, %cst_11 {dimension_numbers = #tpu.dot_dimension_numbers<[1], [1], [0], [0], [0, 0, 1, 0], [], []>} : vector<56x64xbf16>, vector<56x64xbf16>, vector<56x56xf32> -> vector<56x56xf32>
    %14 = arith.addf %13, %1 : vector<56x56xf32>
    %cst_12 = arith.constant dense<0xFF800000> : vector<56xf32>
    %15 = vector.multi_reduction <maximumf>, %14, %cst_12 [1] : vector<56x56xf32> to vector<56xf32>
    %16 = vector.shape_cast %15 : vector<56xf32> to vector<56x1xf32>
    %17 = vector.broadcast %16 : vector<56x1xf32> to vector<56x56xf32>
    %18 = arith.subf %14, %17 : vector<56x56xf32>
    %19 = math.exp %18 : vector<56x56xf32>
    %cst_13 = arith.constant dense<0.000000e+00> : vector<56xf32>
    %20 = vector.multi_reduction <add>, %19, %cst_13 [1] : vector<56x56xf32> to vector<56xf32>
    %21 = vector.shape_cast %20 : vector<56xf32> to vector<56x1xf32>
    %22 = tpu.reciprocal %21 {approx = true} : vector<56x1xf32> -> vector<56x1xf32>
    %23 = vector.broadcast %22 : vector<56x1xf32> to vector<56x56xf32>
    %24 = arith.mulf %19, %23 : vector<56x56xf32>
    %25 = arith.truncf %24 : vector<56x56xf32> to vector<56x56xbf16>
    %cst_14 = arith.constant dense<0.000000e+00> : vector<56x64xf32>
    %26 = tpu.matmul %25, %12, %cst_14 {dimension_numbers = #tpu.dot_dimension_numbers<[1], [0], [0], [1], [0, 0, 1, 1], [], []>} : vector<56x56xbf16>, vector<56x64xbf16>, vector<56x64xf32> -> vector<56x64xf32>
    %c1 = arith.constant 1 : index
    %c0_15 = arith.constant 0 : index
    %c0_16 = arith.constant 0 : index
    %27 = vector.load %arg1[%c1, %c0_15, %c0_16] : memref<2x56x64xf32, #tpu.memory_space<vmem>>, vector<1x56x64xf32>
    %28 = vector.shape_cast %27 : vector<1x56x64xf32> to vector<56x64xf32>
    %cst_17 = arith.constant 1.250000e-01 : f32
    %29 = vector.broadcast %cst_17 : f32 to vector<56x64xf32>
    %30 = arith.mulf %28, %29 : vector<56x64xf32>
    %31 = arith.truncf %30 : vector<56x64xf32> to vector<56x64xbf16>
    %c1_18 = arith.constant 1 : index
    %c0_19 = arith.constant 0 : index
    %c0_20 = arith.constant 0 : index
    %32 = vector.load %arg2[%c1_18, %c0_19, %c0_20] : memref<2x56x64xf32, #tpu.memory_space<vmem>>, vector<1x56x64xf32>
    %33 = vector.shape_cast %32 : vector<1x56x64xf32> to vector<56x64xf32>
    %34 = arith.truncf %33 : vector<56x64xf32> to vector<56x64xbf16>
    %c1_21 = arith.constant 1 : index
    %c0_22 = arith.constant 0 : index
    %c0_23 = arith.constant 0 : index
    %35 = vector.load %arg3[%c1_21, %c0_22, %c0_23] : memref<2x56x64xf32, #tpu.memory_space<vmem>>, vector<1x56x64xf32>
    %36 = vector.shape_cast %35 : vector<1x56x64xf32> to vector<56x64xf32>
    %37 = arith.truncf %36 : vector<56x64xf32> to vector<56x64xbf16>
    %cst_24 = arith.constant dense<0.000000e+00> : vector<56x56xf32>
    %38 = tpu.matmul %31, %34, %cst_24 {dimension_numbers = #tpu.dot_dimension_numbers<[1], [1], [0], [0], [0, 0, 1, 0], [], []>} : vector<56x64xbf16>, vector<56x64xbf16>, vector<56x56xf32> -> vector<56x56xf32>
    %39 = arith.addf %38, %1 : vector<56x56xf32>
    %cst_25 = arith.constant dense<0xFF800000> : vector<56xf32>
    %40 = vector.multi_reduction <maximumf>, %39, %cst_25 [1] : vector<56x56xf32> to vector<56xf32>
    %41 = vector.shape_cast %40 : vector<56xf32> to vector<56x1xf32>
    %42 = vector.broadcast %41 : vector<56x1xf32> to vector<56x56xf32>
    %43 = arith.subf %39, %42 : vector<56x56xf32>
    %44 = math.exp %43 : vector<56x56xf32>
    %cst_26 = arith.constant dense<0.000000e+00> : vector<56xf32>
    %45 = vector.multi_reduction <add>, %44, %cst_26 [1] : vector<56x56xf32> to vector<56xf32>
    %46 = vector.shape_cast %45 : vector<56xf32> to vector<56x1xf32>
    %47 = tpu.reciprocal %46 {approx = true} : vector<56x1xf32> -> vector<56x1xf32>
    %48 = vector.broadcast %47 : vector<56x1xf32> to vector<56x56xf32>
    %49 = arith.mulf %44, %48 : vector<56x56xf32>
    %50 = arith.truncf %49 : vector<56x56xf32> to vector<56x56xbf16>
    %cst_27 = arith.constant dense<0.000000e+00> : vector<56x64xf32>
    %51 = tpu.matmul %50, %37, %cst_27 {dimension_numbers = #tpu.dot_dimension_numbers<[1], [0], [0], [1], [0, 0, 1, 1], [], []>} : vector<56x56xbf16>, vector<56x64xbf16>, vector<56x64xf32> -> vector<56x64xf32>
    %52 = tpu.concatenate %26, %51 in 1 : vector<56x64xf32>, vector<56x64xf32> -> vector<56x128xf32>
    %c0_28 = arith.constant 0 : index
    %c0_29 = arith.constant 0 : index
    %c0_30 = arith.constant 0 : index
    %53 = vector.load %arg5[%c0_28, %c0_29, %c0_30] : memref<1x56x128xf32, #tpu.memory_space<vmem>>, vector<1x56x128xf32>
    %54 = vector.shape_cast %53 : vector<1x56x128xf32> to vector<56x128xf32>
    %55 = vector.shape_cast %52 : vector<56x128xf32> to vector<1x56x128xf32>
    tpu.vector_store %arg5[%c0_28, %c0_29, %c0_30], %55 {strides = array<i32>} : memref<1x56x128xf32, #tpu.memory_space<vmem>>, vector<1x56x128xf32>,
    return
  }
  func.func @transform_0(%arg0: i32) -> (i32, i32, i32) {
    %c0_i32 = arith.constant 0 : i32
    %c0_i32_0 = arith.constant 0 : i32
    %c0_i32_1 = arith.constant 0 : i32
    return %arg0, %c0_i32, %c0_i32_0 : i32, i32, i32
  }
  func.func @transform_1(%arg0: i32) -> (i32, i32, i32) {
    %c0_i32 = arith.constant 0 : i32
    %c0_i32_0 = arith.constant 0 : i32
    %c0_i32_1 = arith.constant 0 : i32
    return %arg0, %c0_i32, %c0_i32_0 : i32, i32, i32
  }
  func.func @transform_2(%arg0: i32) -> (i32, i32, i32) {
    %c0_i32 = arith.constant 0 : i32
    %c0_i32_0 = arith.constant 0 : i32
    %c0_i32_1 = arith.constant 0 : i32
    return %arg0, %c0_i32, %c0_i32_0 : i32, i32, i32
  }
  func.func @transform_3(%arg0: i32) -> (i32, i32, i32) {
    %c0_i32 = arith.constant 0 : i32
    %c0_i32_0 = arith.constant 0 : i32
    %c0_i32_1 = arith.constant 0 : i32
    %c0_i32_2 = arith.constant 0 : i32
    return %c0_i32, %c0_i32_0, %c0_i32_1 : i32, i32, i32
  }
  func.func @transform_4(%arg0: i32) -> (i32, i32, i32) {
    %c0_i32 = arith.constant 0 : i32
    %c0_i32_0 = arith.constant 0 : i32
    %c0_i32_1 = arith.constant 0 : i32
    return %arg0, %c0_i32, %c0_i32_0 : i32, i32, i32
  }
}

</mosaic_0001>

<bundles_post_ra>
// kernel: tpu_custom_call.1
= control target key start
LH: loop header
LB: loop body
LE: loop exit
PB: predicated region body
PF: predicated region fallthrough
CT: control target
= control target key end

     0   :  { %9 = vsyncpa [#allocation3], 0  ;;  %s1294_s0 = inlined_call_operand.hbm [shape: f32[2,56,64], index: 0, kind: input, shape index: {}]   ;;  %s1295_s1 = inlined_call_operand.hbm [shape: f32[2,56,64], index: 1, kind: input, shape index: {}]   ;;  %s1296_s2 = inlined_call_operand.hbm [shape: f32[2,56,64], index: 2, kind: input, shape index: {}]   ;;  %s1297_s3 = inlined_call_operand.hbm [shape: f32[1,56,56], index: 3, kind: input, shape index: {}]   ;;  %s1298_s4 = inlined_call_operand.hbm [shape: f32[1,56,128], index: 4, kind: output, shape index: {}]  }
   0x1   :  { %10 = vsyncpa [#allocation6], 0 }
   0x2   :  { %11 = vsyncpa [#allocation9], 0 }
   0x3   :  { %12 = vsyncpa [#allocation4], 0  ;;  %s1028_s15 = smov [#allocation5]   ;;  %s1029_s17 = smov [#allocation2]  }
   0x4   :  { %s30_s16 = sshll.u32 %s1028_s15, 4  ;;  %s18_s18 = sshll.u32 %s1029_s17, 4  ;;  %s31_s16 = int_to_ptr.vmem [resolvable:$true] %s30_s16  ;;  %s1061_s18 = int_to_ptr.vmem [resolvable:$true] %s18_s18 }
   0x5   :  { %s910_s21 = scalar_lea.hbm %s1295_s1, 1792 }
   0x6   :  { %p911_p0 = scmp.ne.s32.totalorder %s1295_s1, %s910_s21  ;;  %p914_p1 = scmp.lt.u32.totalorder %s910_s21, %s1295_s1 }
   0x8   :  { %p916_p2 = pnand %p914_p1, %p911_p0 }
   0xa   :  { %919 = shalt.err (!%p916_p2)
}
   0xb   :  { %s920_s26 = scalar_lea.vmem %s31_s16, 1792  ;;  %p925_p4 = scmp.lt.s32.totalorder %s31_s16, %s31_s16 }
   0xc   :  { %p921_p3 = scmp.ne.s32.totalorder %s31_s16, %s920_s26  ;;  %p926_p5 = scmp.lt.s32.totalorder %s920_s26, %s920_s26 }
   0xe   :  { %p927_p6 = por %p926_p5, %p925_p4 }
  0x10   :  { %p928_p7 = pnand %p927_p6, %p921_p3 }
  0x12   :  { %931 = shalt.err (!%p928_p7)
}
  0x13   :  { %s1030_s27 = smov 128   ;;  %s1031_s28 = smov 8  }
  0x14   :  { %36 = dma.hbm_to_vmem [thread:$0]  %s1295_s1, 1792, %s31_s16, [#allocation6], %s1030_s27, %s1030_s27, %s1031_s28  }
  0x15   :  { %s932_s7 = scalar_lea.hbm %s1294_s0, 1792 }
  0x16   :  { %p933_p8 = scmp.ne.s32.totalorder %s1294_s0, %s932_s7  ;;  %p936_p9 = scmp.lt.u32.totalorder %s932_s7, %s1294_s0 }
  0x18   :  { %p938_p10 = pnand %p936_p9, %p933_p8 }
  0x1a   :  { %941 = shalt.err (!%p938_p10)
}
  0x1b   :  { %s942_s12 = scalar_lea.vmem %s1061_s18, 1792  ;;  %p947_p12 = scmp.lt.s32.totalorder %s1061_s18, %s1061_s18 }
  0x1c   :  { %p943_p11 = scmp.ne.s32.totalorder %s1061_s18, %s942_s12  ;;  %p948_p13 = scmp.lt.s32.totalorder %s942_s12, %s942_s12 }
  0x1e   :  { %p949_p0 = por %p948_p13, %p947_p12 }
  0x20   :  { %p950_p1 = pnand %p949_p0, %p943_p11 }
  0x22   :  { %953 = shalt.err (!%p950_p1)
}
  0x23   :  { %24 = dma.hbm_to_vmem [thread:$0]  %s1294_s0, 1792, %s1061_s18, [#allocation3], %s1030_s27, %s1030_s27, %s1031_s28  }
  0x24   :  { %s1032_s14 = smov [#allocation7]   ;;  %s1033_s16 = smov [#allocation8]  }
  0x25   :  { %s42_s15 = sshll.u32 %s1032_s14, 4  ;;  %s54_s17 = sshll.u32 %s1033_s16, 4  ;;  %s43_s15 = int_to_ptr.vmem [resolvable:$true] %s42_s15  ;;  %s1098_s17 = int_to_ptr.vmem [resolvable:$true] %s54_s17 }
  0x26   :  { %s954_s21 = scalar_lea.hbm %s1296_s2, 1792 }
  0x27   :  { %p955_p2 = scmp.ne.s32.totalorder %s1296_s2, %s954_s21  ;;  %p958_p3 = scmp.lt.u32.totalorder %s954_s21, %s1296_s2 }
  0x29   :  { %p960_p4 = pnand %p958_p3, %p955_p2 }
  0x2b   :  { %963 = shalt.err (!%p960_p4)
}
  0x2c   :  { %s964_s0 = scalar_lea.vmem %s43_s15, 1792  ;;  %p969_p6 = scmp.lt.s32.totalorder %s43_s15, %s43_s15 }
  0x2d   :  { %p965_p5 = scmp.ne.s32.totalorder %s43_s15, %s964_s0  ;;  %p970_p7 = scmp.lt.s32.totalorder %s964_s0, %s964_s0 }
  0x2f   :  { %p971_p8 = por %p970_p7, %p969_p6 }
  0x31   :  { %p972_p9 = pnand %p971_p8, %p965_p5 }
  0x33   :  { %975 = shalt.err (!%p972_p9)
}
  0x34   :  { %48 = dma.hbm_to_vmem [thread:$0]  %s1296_s2, 1792, %s43_s15, [#allocation6], %s1030_s27, %s1030_s27, %s1031_s28  }
  0x35   :  { %s976_s5 = scalar_lea.hbm %s1297_s3, 896 }
  0x36   :  { %p977_p10 = scmp.ne.s32.totalorder %s1297_s3, %s976_s5  ;;  %p980_p11 = scmp.lt.u32.totalorder %s976_s5, %s1297_s3 }
  0x38   :  { %p982_p12 = pnand %p980_p11, %p977_p10 }
  0x3a   :  { %985 = shalt.err (!%p982_p12)
}
  0x3b   :  { %s986_s10 = scalar_lea.vmem %s1098_s17, 896  ;;  %p991_p0 = scmp.lt.s32.totalorder %s1098_s17, %s1098_s17 }
  0x3c   :  { %p987_p13 = scmp.ne.s32.totalorder %s1098_s17, %s986_s10  ;;  %p992_p1 = scmp.lt.s32.totalorder %s986_s10, %s986_s10 }
  0x3e   :  { %p993_p2 = por %p992_p1, %p991_p0 }
  0x40   :  { %p994_p3 = pnand %p993_p2, %p987_p13 }
  0x42   :  { %997 = shalt.err (!%p994_p3)
}
  0x43   :  { %60 = dma.hbm_to_vmem [thread:$0]  %s1297_s3, 896, %s1098_s17, [#allocation9], %s1030_s27, %s1030_s27, %s1031_s28  }
  0x44   :  { %1020 = dma.done.wait [#allocation3], 1792  }
  0x45   :  { %1021 = vsyncadd [#allocation3], 4294965504 }
  0x46   :  { %1022 = dma.done.wait [#allocation6], 3584  }
  0x47   :  { %1023 = vsyncadd [#allocation6], 4294963712 }
  0x48   :  { %1024 = dma.done.wait [#allocation9], 896  }
  0x49   :  { %1025 = vsyncadd [#allocation9], 4294966400  ;;  %v99_v0 = vld [vmem:[#allocation5] sm:$0xff]  ;;  %v100_v1 = vld [vmem:[#allocation5 + $0x8] sm:$0xff]  ;;  %vm121_vm0 = vcmask 523264   ;;  %vm210_vm1 = vcmask 457728  }
  0x4a   :  { %v101_v2 = vld [vmem:[#allocation5 + $0x10] sm:$0xff]  ;;  %v106_v3 = vpack.c.bf16 %v100_v1, %v99_v0  ;;  %v102_v4 = vld [vmem:[#allocation5 + $0x18] sm:$0xff]  ;;  %v103_v12 = vld [vmem:[#allocation5 + $0x20] sm:$0xff]  ;;  %vm304_vm2 = vcmask 1043456   ;;  %s1034_s3 = smov 64   ;;  %s1035_s12 = smov [#allocation10]  }
  0x4b   :  { %v107_v5 = vpack.c.bf16 %v102_v4, %v101_v2  ;;  %v81_v6 = vld [vmem:[#allocation2] sm:$0xff]  ;;  %v82_v7 = vld [vmem:[#allocation2 + $0x8] sm:$0xff]  ;;  %v104_v13 = vld [vmem:[#allocation5 + $0x28] sm:$0xff]  ;;  %s710_s1 = sshll.u32 %s1035_s12, 4  ;;  %s711_s1 = int_to_ptr.vmem [resolvable:$true] %s710_s1 }
  0x4c   :  { %836 = vmatprep.subr.msk.bf16.mxu0 %vm121_vm0, %v106_v3  ;;  %v135_v8 = vsel %vm121_vm0, %v106_v3, 0  ;;  %v88_v9 = vmul.f32 0.125, %v81_v6  ;;  %v89_v10 = vmul.f32 0.125, %v82_v7  ;;  %v108_v15 = vpack.c.bf16 %v104_v13, %v103_v12  ;;  %v105_v16 = vld [vmem:[#allocation5 + $0x30] sm:$0xff]  ;;  %v83_v19 = vld [vmem:[#allocation2 + $0x10] sm:$0xff]  ;;  %v84_v20 = vld [vmem:[#allocation2 + $0x18] sm:$0xff]  ;;  %p1003_p5 = scmp.lt.s32.totalorder %s711_s1, %s711_s1 }
  0x4d   :  { %773 = vmatpush3.bf16.xpose.msra.mxu0 %v135_v8  ;;  %v138_v14 = vsel %vm121_vm0, %v107_v5, 0  ;;  %v109_v18 = vpack.c.bf16 %v105_v16, %v105_v16  ;;  %v85_v22 = vld [vmem:[#allocation2 + $0x20] sm:$0xff]  ;;  %v86_v23 = vld [vmem:[#allocation2 + $0x28] sm:$0xff]  ;;  %v90_v24 = vmul.f32 0.125, %v83_v19  ;;  %v91_v25 = vmul.f32 0.125, %v84_v20  ;;  %v87_v30 = vld [vmem:[#allocation2 + $0x30] sm:$0xff] }
  0x4e   :  { %837 = vmatprep.subr.msk.bf16.mxu0 %vm121_vm0, %v107_v5  ;;  %v95_v11 = vpack.c.bf16 %v89_v10, %v88_v9  ;;  %v141_v17 = vsel %vm121_vm0, %v108_v15, 0  ;;  %v92_v26 = vmul.f32 0.125, %v85_v22  ;;  %v93_v27 = vmul.f32 0.125, %v86_v23  ;;  %v1147_v33 = vld [vmem:[#allocation8 + $0x10] sm:$0xff]  ;;  %v1149_v34 = vld [vmem:[#allocation8] sm:$0xff]  ;;  %v1151_v36 = vld [vmem:[#allocation8 + $0x18] sm:$0xff] }
  0x4f   :  { %v144_v21 = vsel %vm121_vm0, %v109_v18, 0  ;;  %v96_v28 = vpack.c.bf16 %v91_v25, %v90_v24  ;;  %v94_v31 = vmul.f32 0.125, %v87_v30  ;;  %v1154_v39 = vld [vmem:[#allocation8 + $0x8] sm:$0xff]  ;;  %v1161_v47 = vld [vmem:[#allocation8 + $0x30] sm:$0xff]  ;;  %v1164_v49 = vld [vmem:[#allocation8 + $0x20] sm:$0xff]  ;;  %s998_s13 = scalar_lea.vmem %s711_s1, 896 }
  0x50   :  { %780 = vmatprep.mubr.msk.bf16.mxu0 %vm121_vm0, %v95_v11  ;;  %v97_v29 = vpack.c.bf16 %v93_v27, %v92_v26  ;;  %v1167_v53 = vld [vmem:[#allocation8 + $0x28] sm:$0xff]  ;;  %p999_p4 = scmp.ne.s32.totalorder %s711_s1, %s998_s13  ;;  %p1004_p6 = scmp.lt.s32.totalorder %s998_s13, %s998_s13 }
  0x51   :  { %v98_v32 = vpack.c.bf16 %v94_v31, %v94_v31 }
  0x52   :  { %p1005_p7 = por %p1004_p6, %p1003_p5 }
  0x54   :  { %p1006_p8 = pnand %p1005_p7, %p999_p4 }
  0x55   :  { %775 = vmatpush3.bf16.xpose.msra.mxu0 %v138_v14 }
  0x56   :  { %838 = vmatprep.subr.msk.bf16.mxu0 %vm121_vm0, %v108_v15 }
  0x5d   :  { %777 = vmatpush3.bf16.xpose.msra.mxu0 %v141_v17 }
  0x5e   :  { %839 = vmatprep.subr.msk.bf16.mxu0 %vm121_vm0, %v109_v18 }
  0x65   :  { %779 = vmatpush3.bf16.xpose.msra.mxu0 %v144_v21 }
  0x6c   :  { %781 = vmatmul.mubr.msk.bf16.vlgmr.msra.gmra.mrb[0].mxu0 %vm121_vm0, %v96_v28 }
  0x6d   :  { %784 = vmatprep.mubr.msk.bf16.mxu0 %vm121_vm0, %v97_v29 }
  0x74   :  { %785 = vmatmul.mubr.msk.bf16.gmra.mrb[4].mxu0 %vm121_vm0, %v98_v32 }
 0x13f   :  { %v782_v35 = vpop.f32.mrb[0].mxu0 }
 0x140   :  { %v189_v37 = vadd.f32 %v782_v35, %v1147_v33  ;;  %v180_v38 = vpop.f32.mrb[1].mxu0  ;;  %v110_v35 = vld [vmem:[#allocation7] sm:$0xff] }
 0x141   :  { %v181_v40 = vadd.f32 %v180_v38, %v1149_v34  ;;  %v783_v41 = vpop.f32.mrb[2].mxu0 }
 0x142   :  { %v192_v42 = vadd.f32 %v783_v41, %v1151_v36  ;;  %v183_v43 = vpop.f32.mrb[3].mxu0  ;;  %v217_v44 = vsel %vm210_vm1, %v189_v37, -inf  ;;  %v113_v41 = vld [vmem:[#allocation7 + $0x18] sm:$0xff] }
 0x143   :  { %v184_v45 = vadd.f32 %v183_v43, %v1154_v39  ;;  %218 = vmax.xlane.f32.xlu1 %v217_v44  ;;  %v211_v46 = vsel %vm210_vm1, %v181_v40, -inf  ;;  %v114_v43 = vld [vmem:[#allocation7 + $0x20] sm:$0xff]  ;;  %v115_v44 = vld [vmem:[#allocation7 + $0x28] sm:$0xff] }
 0x144   :  { %212 = vmax.xlane.f32.xlu0 %v211_v46  ;;  %v220_v48 = vsel %vm210_vm1, %v192_v42, -inf  ;;  %v116_v46 = vld [vmem:[#allocation7 + $0x30] sm:$0xff] }
 0x145   :  { %v214_v51 = vsel %vm210_vm1, %v184_v45, -inf }
 0x147   :  { %v786_v50 = vpop.f32.mrb[4].mxu0  ;;  %221 = vmax.xlane.f32.xlu1 %v220_v48  ;;  %v120_v48 = vpack.c.bf16 %v116_v46, %v116_v46 }
 0x148   :  { %v196_v52 = vpop.f32.mrb[5].mxu0  ;;  %215 = vmax.xlane.f32.xlu0 %v214_v51  ;;  %v205_v54 = vadd.f32 %v786_v50, %v1161_v47  ;;  %v392_v51 = vld [vmem:[#allocation5 + $0x38] sm:$0xff] }
 0x149   :  { %v197_v55 = vadd.f32 %v196_v52, %v1164_v49  ;;  %v787_v56 = vpop.f32.mrb[6].mxu0  ;;  %v306_v50 = vsel %vm304_vm2, %v120_v48, 0  ;;  %v393_v52 = vld [vmem:[#allocation5 + $0x40] sm:$0xff] }
 0x14a   :  { %v199_v57 = vpop.f32.mrb[7].mxu0  ;;  %v229_v61 = vsel %vm210_vm1, %v205_v54, -inf }
 0x14b   :  { %v200_v58 = vadd.f32 %v199_v57, %v1167_v53  ;;  %v223_v59 = vsel %vm210_vm1, %v197_v55, -inf }
 0x14c   :  { %224 = vmax.xlane.f32.xlu0 %v223_v59 }
 0x14d   :  { %v226_v60 = vsel %vm210_vm1, %v200_v58, -inf }
 0x14e   :  { %227 = vmax.xlane.f32.xlu1 %v226_v60 }
 0x150   :  { %230 = vmax.xlane.f32.xlu0 %v229_v61 }
 0x1d0   :  { %v219_v62 = vpop.xlane.xlu1 %218 }
 0x1d1   :  { %v234_v63 = vsub.f32 %v189_v37, %v219_v62  ;;  %v213_v0 = vpop.xlane.xlu0 %212  ;;  %v111_v37 = vld [vmem:[#allocation7 + $0x8] sm:$0xff] }
 0x1d2   :  { %v232_v1 = vsub.f32 %v181_v40, %v213_v0  ;;  %v117_v38 = vpack.c.bf16 %v111_v37, %v110_v35  ;;  %v112_v40 = vld [vmem:[#allocation7 + $0x10] sm:$0xff] }
 0x1d3   :  { %v243_v2 = vmul.f32 1.442695, %v234_v63  ;;  %v376_v35 = vld [vmem:[#allocation2 + $0x50] sm:$0xff] }
 0x1d4   :  { %v239_v3 = vmul.f32 1.442695, %v232_v1  ;;  %v222_v4 = vpop.xlane.xlu1 %221  ;;  %788 = vmatprep.subr.bf16.mxu1 %v117_v38 }
 0x1d5   :  { %v235_v5 = vsub.f32 %v192_v42, %v222_v4  ;;  %v216_v6 = vpop.xlane.xlu0 %215  ;;  %789 = vmatpush3.bf16.msra.mxu1 %v117_v38  ;;  %v118_v42 = vpack.c.bf16 %v113_v41, %v112_v40  ;;  %v377_v38 = vld [vmem:[#allocation2 + $0x58] sm:$0xff]  ;;  %v378_v40 = vld [vmem:[#allocation2 + $0x60] sm:$0xff] }
 0x1d6   :  { %854 = vpow2.f32 %v239_v3  ;;  %v233_v7 = vsub.f32 %v184_v45, %v216_v6  ;;  %v119_v45 = vpack.c.bf16 %v115_v44, %v114_v43  ;;  %v395_v6 = vld [vmem:[#allocation5 + $0x50] sm:$0xff]  ;;  %v384_v43 = vmul.f32 0.125, %v377_v38 }
 0x1d7   :  { %856 = vpow2.f32 %v243_v2  ;;  %v245_v8 = vmul.f32 1.442695, %v235_v5  ;;  %790 = vmatprep.subr.bf16.mxu1 %v118_v42  ;;  %v394_v5 = vld [vmem:[#allocation5 + $0x48] sm:$0xff]  ;;  %v385_v44 = vmul.f32 0.125, %v378_v40 }
 0x1d8   :  { %v241_v9 = vmul.f32 1.442695, %v233_v7 }
 0x1d9   :  { %v225_v10 = vpop.xlane.xlu0 %224  ;;  %791 = vmatpush3.bf16.msra.mxu1 %v118_v42  ;;  %v383_v42 = vmul.f32 0.125, %v376_v35  ;;  %v389_v46 = vpack.c.bf16 %v385_v44, %v384_v43 }
 0x1da   :  { %858 = vpow2.f32 %v241_v9  ;;  %v236_v11 = vsub.f32 %v197_v55, %v225_v10  ;;  %792 = vmatprep.subr.bf16.mxu1 %v119_v45 }
 0x1db   :  { %v228_v12 = vpop.xlane.xlu1 %227  ;;  %860 = vpow2.f32 %v245_v8 }
 0x1dc   :  { %v247_v13 = vmul.f32 1.442695, %v236_v11  ;;  %v237_v14 = vsub.f32 %v200_v58, %v228_v12  ;;  %v400_v12 = vpack.c.bf16 %v395_v6, %v394_v5 }
 0x1dd   :  { %v231_v15 = vpop.xlane.xlu0 %230  ;;  %793 = vmatpush3.bf16.msra.mxu1 %v119_v45 }
 0x1de   :  { %862 = vpow2.f32 %v247_v13  ;;  %v249_v16 = vmul.f32 1.442695, %v237_v14  ;;  %v238_v17 = vsub.f32 %v205_v54, %v231_v15  ;;  %840 = vmatprep.subr.msk.bf16.mxu1 %vm304_vm2, %v120_v48  ;;  %v399_v54 = vpack.c.bf16 %v393_v52, %v392_v51  ;;  %v373_v13 = vld [vmem:[#allocation2 + $0x38] sm:$0xff]  ;;  %v374_v14 = vld [vmem:[#allocation2 + $0x40] sm:$0xff]  ;;  %v379_v48 = vld [vmem:[#allocation2 + $0x68] sm:$0xff] }
 0x1e0   :  { %v1175_v18 = vpop.eup %854  ;;  %864 = vpow2.f32 %v249_v16  ;;  %v251_v19 = vmul.f32 1.442695, %v238_v17  ;;  %v428_v11 = vsel %vm121_vm0, %v399_v54, 0 }
 0x1e1   :  { %v253_v20 = vsel %vm210_vm1, %v1175_v18, 0.0  ;;  %v1179_v21 = vpop.eup %856  ;;  %795 = vmatpush3.bf16.msra.mxu1 %v306_v50  ;;  %v386_v50 = vmul.f32 0.125, %v379_v48 }
 0x1e2   :  { %866 = vpow2.f32 %v251_v19  ;;  %254 = vadd.xlane.f32.xlu1 %v253_v20  ;;  %v259_v24 = vsel %vm210_vm1, %v1179_v21, 0.0  ;;  %841 = vmatprep.subr.msk.bf16.mxu1 %vm121_vm0, %v399_v54  ;;  %v380_v19 = vmul.f32 0.125, %v373_v13  ;;  %v381_v20 = vmul.f32 0.125, %v374_v14 }
 0x1e3   :  { %v390_v51 = vpack.c.bf16 %v386_v50, %v386_v50 }
 0x1e4   :  { %v859_v22 = vpop.eup %858 }
 0x1e5   :  { %v256_v23 = vsel %vm210_vm1, %v859_v22, 0.0  ;;  %v1184_v25 = vpop.eup %860 }
 0x1e6   :  { %257 = vadd.xlane.f32.xlu0 %v256_v23  ;;  %260 = vadd.xlane.f32.xlu1 %v259_v24  ;;  %v262_v28 = vsel %vm210_vm1, %v1184_v25, 0.0  ;;  %v396_v23 = vld [vmem:[#allocation5 + $0x58] sm:$0xff]  ;;  %v397_v24 = vld [vmem:[#allocation5 + $0x60] sm:$0xff] }
 0x1e8   :  { %v1186_v26 = vpop.eup %862 }
 0x1e9   :  { %v265_v27 = vsel %vm210_vm1, %v1186_v26, 0.0 }
 0x1ea   :  { %v1192_v29 = vpop.eup %864  ;;  %266 = vadd.xlane.f32.xlu1 %v265_v27  ;;  %263 = vadd.xlane.f32.xlu0 %v262_v28  ;;  %v431_v28 = vsel %vm121_vm0, %v400_v12, 0 }
 0x1eb   :  { %v268_v32 = vsel %vm210_vm1, %v1192_v29, 0.0 }
 0x1ec   :  { %v1194_v30 = vpop.eup %866 }
 0x1ed   :  { %v271_v31 = vsel %vm210_vm1, %v1194_v30, 0.0 }
 0x1ee   :  { %272 = vadd.xlane.f32.xlu1 %v271_v31  ;;  %269 = vadd.xlane.f32.xlu0 %v268_v32  ;;  %v401_v31 = vpack.c.bf16 %v397_v24, %v396_v23  ;;  %v375_v32 = vld [vmem:[#allocation2 + $0x48] sm:$0xff] }
 0x1ef   :  { %v382_v41 = vmul.f32 0.125, %v375_v32 }
 0x1f1   :  { %v388_v45 = vpack.c.bf16 %v383_v42, %v382_v41 }
 0x26f   :  { %v255_v55 = vpop.xlane.xlu1 %254 }
 0x270   :  { %868 = vrcp.f32 %v255_v55 }
 0x273   :  { %v258_v56 = vpop.xlane.xlu0 %257  ;;  %v261_v57 = vpop.xlane.xlu1 %260 }
 0x274   :  { %870 = vrcp.f32 %v258_v56 }
 0x275   :  { %872 = vrcp.f32 %v261_v57 }
 0x277   :  { %v264_v58 = vpop.xlane.xlu0 %263  ;;  %v267_v59 = vpop.xlane.xlu1 %266 }
 0x278   :  { %874 = vrcp.f32 %v264_v58 }
 0x279   :  { %876 = vrcp.f32 %v267_v59 }
 0x27a   :  { %v869_v62 = vpop.eup %868 }
 0x27b   :  { %v270_v60 = vpop.xlane.xlu0 %269  ;;  %v273_v61 = vpop.xlane.xlu1 %272  ;;  %v281_v0 = vmul.f32 %v869_v62, %v1175_v18 }
 0x27c   :  { %878 = vrcp.f32 %v270_v60 }
 0x27d   :  { %880 = vrcp.f32 %v273_v61 }
 0x27e   :  { %v871_v63 = vpop.eup %870 }
 0x27f   :  { %v282_v1 = vmul.f32 %v871_v63, %v859_v22  ;;  %v873_v2 = vpop.eup %872 }
 0x280   :  { %v283_v7 = vmul.f32 %v873_v2, %v1179_v21 }
 0x281   :  { %v288_v3 = vpack.c.bf16 %v282_v1, %v281_v0 }
 0x282   :  { %v875_v4 = vpop.eup %874 }
 0x283   :  { %796 = vmatprep.mubr.msk.bf16.mxu1 %vm210_vm1, %v288_v3  ;;  %v284_v8 = vmul.f32 %v875_v4, %v1184_v25  ;;  %v877_v9 = vpop.eup %876  ;;  %v387_v25 = vpack.c.bf16 %v381_v20, %v380_v19 }
 0x284   :  { %v285_v17 = vmul.f32 %v877_v9, %v1186_v26  ;;  %v398_v26 = vld [vmem:[#allocation5 + $0x68] sm:$0xff] }
 0x285   :  { %v289_v10 = vpack.c.bf16 %v284_v8, %v283_v7 }
 0x286   :  { %v879_v15 = vpop.eup %878 }
 0x287   :  { %v881_v16 = vpop.eup %880  ;;  %797 = vmatmul.mubr.msk.bf16.vlgmr.msra.gmra.mrb[0].mxu1 %vm210_vm1, %v289_v10  ;;  %v286_v18 = vmul.f32 %v879_v15, %v1192_v29  ;;  %v434_v29 = vsel %vm121_vm0, %v401_v31, 0 }
 0x288   :  { %805 = vmatpush3.bf16.xpose.msra.mxu1 %v428_v11  ;;  %v287_v22 = vmul.f32 %v881_v16, %v1194_v30  ;;  %v402_v30 = vpack.c.bf16 %v398_v26, %v398_v26 }
 0x289   :  { %v290_v21 = vpack.c.bf16 %v286_v18, %v285_v17  ;;  %842 = vmatprep.subr.msk.bf16.mxu1 %vm121_vm0, %v400_v12 }
 0x28a   :  { %v291_v27 = vpack.c.bf16 %v287_v22, %v287_v22  ;;  %v437_v37 = vsel %vm121_vm0, %v402_v30, 0 }
 0x28b   :  { %800 = vmatprep.mubr.msk.bf16.mxu1 %vm210_vm1, %v290_v21 }
 0x28f   :  { %801 = vmatmul.mubr.msk.bf16.gmra.mrb[4].mxu1 %vm210_vm1, %v291_v27 }
 0x290   :  { %807 = vmatpush3.bf16.xpose.msra.mxu1 %v431_v28  ;;  %812 = vmatprep.mubr.msk.bf16.mxu1 %vm121_vm0, %v387_v25 }
 0x291   :  { %843 = vmatprep.subr.msk.bf16.mxu1 %vm121_vm0, %v401_v31 }
 0x298   :  { %809 = vmatpush3.bf16.xpose.msra.mxu1 %v434_v29 }
 0x299   :  { %844 = vmatprep.subr.msk.bf16.mxu1 %vm121_vm0, %v402_v30 }
 0x2a0   :  { %811 = vmatpush3.bf16.xpose.msra.mxu1 %v437_v37 }
 0x2a7   :  { %813 = vmatmul.mubr.msk.bf16.vlgmr.msra.gmra.mrb[8].mxu1 %vm121_vm0, %v388_v45 }
 0x2a8   :  { %816 = vmatprep.mubr.msk.bf16.mxu1 %vm121_vm0, %v389_v46 }
 0x2af   :  { %817 = vmatmul.mubr.msk.bf16.gmra.mrb[12].mxu1 %vm121_vm0, %v390_v51 }
 0x35a   :  { %v1224_v52 = vpop.f32.mrb[0].mxu1 }
 0x35b   :  { %v1226_v54 = vpop.f32.mrb[1].mxu1 }
 0x35c   :  { %v1228_v55 = vpop.f32.mrb[2].mxu1 }
 0x35d   :  { %v1230_v56 = vpop.f32.mrb[3].mxu1 }
 0x362   :  { %v1232_v57 = vpop.f32.mrb[4].mxu1 }
 0x363   :  { %v1234_v58 = vpop.f32.mrb[5].mxu1 }
 0x364   :  { %v803_v59 = vpop.f32.mrb[6].mxu1 }
 0x365   :  { %v1236_v60 = vpop.f32.mrb[7].mxu1 }
 0x37a   :  { %v814_v61 = vpop.f32.mrb[8].mxu1 }
 0x37b   :  { %v473_v62 = vpop.f32.mrb[9].mxu1  ;;  %v482_v2 = vadd.f32 %v814_v61, %v1147_v33  ;;  %v404_v61 = vld [vmem:[#allocation7 + $0x38] sm:$0xff] }
 0x37c   :  { %v474_v63 = vadd.f32 %v473_v62, %v1149_v34  ;;  %v815_v0 = vpop.f32.mrb[10].mxu1  ;;  %v405_v62 = vld [vmem:[#allocation7 + $0x40] sm:$0xff] }
 0x37d   :  { %v476_v1 = vpop.f32.mrb[11].mxu1  ;;  %v485_v5 = vadd.f32 %v815_v0, %v1151_v36  ;;  %v509_v8 = vsel %vm210_vm1, %v482_v2, -inf  ;;  %v406_v0 = vld [vmem:[#allocation7 + $0x48] sm:$0xff] }
 0x37e   :  { %v477_v3 = vadd.f32 %v476_v1, %v1154_v39  ;;  %v503_v4 = vsel %vm210_vm1, %v474_v63, -inf  ;;  %v407_v1 = vld [vmem:[#allocation7 + $0x50] sm:$0xff] }
 0x37f   :  { %504 = vmax.xlane.f32.xlu0 %v503_v4  ;;  %v512_v33 = vsel %vm210_vm1, %v485_v5, -inf  ;;  %v409_v4 = vld [vmem:[#allocation7 + $0x60] sm:$0xff] }
 0x380   :  { %v506_v6 = vsel %vm210_vm1, %v477_v3, -inf }
 0x381   :  { %507 = vmax.xlane.f32.xlu1 %v506_v6  ;;  %v410_v6 = vld [vmem:[#allocation7 + $0x68] sm:$0xff] }
 0x382   :  { %v818_v7 = vpop.f32.mrb[12].mxu1 }
 0x383   :  { %v489_v9 = vpop.f32.mrb[13].mxu1  ;;  %510 = vmax.xlane.f32.xlu0 %v509_v8  ;;  %v498_v39 = vadd.f32 %v818_v7, %v1161_v47  ;;  %v414_v7 = vpack.c.bf16 %v410_v6, %v410_v6 }
 0x384   :  { %v490_v34 = vadd.f32 %v489_v9, %v1164_v49  ;;  %v819_v10 = vpop.f32.mrb[14].mxu1 }
 0x385   :  { %v492_v11 = vpop.f32.mrb[15].mxu1  ;;  %513 = vmax.xlane.f32.xlu1 %v512_v33  ;;  %v521_v14 = vsel %vm210_vm1, %v498_v39, -inf  ;;  %v597_v8 = vsel %vm304_vm2, %v414_v7, 0 }
 0x386   :  { %v493_v12 = vadd.f32 %v492_v11, %v1167_v53  ;;  %v515_v36 = vsel %vm210_vm1, %v490_v34, -inf }
 0x387   :  { %516 = vmax.xlane.f32.xlu0 %v515_v36 }
 0x388   :  { %v518_v13 = vsel %vm210_vm1, %v493_v12, -inf }
 0x389   :  { %519 = vmax.xlane.f32.xlu1 %v518_v13 }
 0x38b   :  { %522 = vmax.xlane.f32.xlu0 %v521_v14 }
 0x40c   :  { %v505_v15 = vpop.xlane.xlu0 %504 }
 0x40d   :  { %v524_v49 = vsub.f32 %v474_v63, %v505_v15  ;;  %v411_v63 = vpack.c.bf16 %v405_v62, %v404_v61 }
 0x40e   :  { %v508_v16 = vpop.xlane.xlu1 %507 }
 0x40f   :  { %v531_v17 = vmul.f32 1.442695, %v524_v49  ;;  %v525_v18 = vsub.f32 %v477_v3, %v508_v16  ;;  %820 = vmatprep.subr.bf16.mxu0 %v411_v63  ;;  %v408_v3 = vld [vmem:[#allocation7 + $0x58] sm:$0xff] }
 0x410   :  { %v511_v19 = vpop.xlane.xlu0 %510  ;;  %821 = vmatpush3.bf16.msra.mxu0 %v411_v63 }
 0x411   :  { %882 = vpow2.f32 %v531_v17  ;;  %v533_v20 = vmul.f32 1.442695, %v525_v18  ;;  %v526_v47 = vsub.f32 %v482_v2, %v511_v19  ;;  %v412_v2 = vpack.c.bf16 %v407_v1, %v406_v0 }
 0x412   :  { %v514_v21 = vpop.xlane.xlu1 %513 }
 0x413   :  { %884 = vpow2.f32 %v533_v20  ;;  %v535_v53 = vmul.f32 1.442695, %v526_v47  ;;  %v527_v22 = vsub.f32 %v485_v5, %v514_v21  ;;  %822 = vmatprep.subr.bf16.mxu0 %v412_v2  ;;  %v413_v5 = vpack.c.bf16 %v409_v4, %v408_v3 }
 0x414   :  { %v517_v23 = vpop.xlane.xlu0 %516  ;;  %823 = vmatpush3.bf16.msra.mxu0 %v412_v2 }
 0x415   :  { %886 = vpow2.f32 %v535_v53  ;;  %v537_v24 = vmul.f32 1.442695, %v527_v22  ;;  %v528_v25 = vsub.f32 %v490_v34, %v517_v23  ;;  %824 = vmatprep.subr.bf16.mxu0 %v413_v5 }
 0x416   :  { %v520_v27 = vpop.xlane.xlu1 %519 }
 0x417   :  { %888 = vpow2.f32 %v537_v24  ;;  %v539_v28 = vmul.f32 1.442695, %v528_v25  ;;  %v529_v31 = vsub.f32 %v493_v12, %v520_v27 }
 0x418   :  { %v523_v26 = vpop.xlane.xlu0 %522  ;;  %825 = vmatpush3.bf16.msra.mxu0 %v413_v5 }
 0x419   :  { %890 = vpow2.f32 %v539_v28  ;;  %v541_v29 = vmul.f32 1.442695, %v529_v31  ;;  %v530_v30 = vsub.f32 %v498_v39, %v523_v26  ;;  %845 = vmatprep.subr.msk.bf16.mxu0 %vm304_vm2, %v414_v7 }
 0x41b   :  { %v883_v32 = vpop.eup %882  ;;  %892 = vpow2.f32 %v541_v29  ;;  %v543_v35 = vmul.f32 1.442695, %v530_v30 }
 0x41c   :  { %v545_v37 = vsel %vm210_vm1, %v883_v32, 0.0  ;;  %827 = vmatpush3.bf16.msra.mxu0 %v597_v8 }
 0x41d   :  { %v885_v38 = vpop.eup %884  ;;  %894 = vpow2.f32 %v543_v35  ;;  %546 = vadd.xlane.f32.xlu1 %v545_v37 }
 0x41e   :  { %v548_v40 = vsel %vm210_vm1, %v885_v38, 0.0 }
 0x41f   :  { %v887_v41 = vpop.eup %886  ;;  %549 = vadd.xlane.f32.xlu0 %v548_v40 }
 0x420   :  { %v551_v42 = vsel %vm210_vm1, %v887_v41, 0.0 }
 0x421   :  { %v889_v43 = vpop.eup %888  ;;  %552 = vadd.xlane.f32.xlu1 %v551_v42 }
 0x422   :  { %v554_v44 = vsel %vm210_vm1, %v889_v43, 0.0 }
 0x423   :  { %v891_v45 = vpop.eup %890  ;;  %555 = vadd.xlane.f32.xlu0 %v554_v44 }
 0x424   :  { %v557_v46 = vsel %vm210_vm1, %v891_v45, 0.0 }
 0x425   :  { %v893_v48 = vpop.eup %892  ;;  %558 = vadd.xlane.f32.xlu1 %v557_v46 }
 0x426   :  { %v560_v50 = vsel %vm210_vm1, %v893_v48, 0.0 }
 0x427   :  { %v895_v51 = vpop.eup %894  ;;  %561 = vadd.xlane.f32.xlu0 %v560_v50 }
 0x428   :  { %v563_v59 = vsel %vm210_vm1, %v895_v51, 0.0 }
 0x429   :  { %564 = vadd.xlane.f32.xlu1 %v563_v59 }
 0x4aa   :  { %v547_v9 = vpop.xlane.xlu1 %546 }
 0x4ab   :  { %896 = vrcp.f32 %v547_v9 }
 0x4ac   :  { %v550_v34 = vpop.xlane.xlu0 %549 }
 0x4ad   :  { %898 = vrcp.f32 %v550_v34 }
 0x4ae   :  { %v553_v10 = vpop.xlane.xlu1 %552 }
 0x4af   :  { %900 = vrcp.f32 %v553_v10 }
 0x4b0   :  { %v556_v33 = vpop.xlane.xlu0 %555 }
 0x4b1   :  { %902 = vrcp.f32 %v556_v33 }
 0x4b2   :  { %v559_v11 = vpop.xlane.xlu1 %558 }
 0x4b3   :  { %904 = vrcp.f32 %v559_v11 }
 0x4b4   :  { %v562_v39 = vpop.xlane.xlu0 %561 }
 0x4b5   :  { %v897_v12 = vpop.eup %896  ;;  %906 = vrcp.f32 %v562_v39 }
 0x4b6   :  { %v565_v36 = vpop.xlane.xlu1 %564  ;;  %v573_v14 = vmul.f32 %v897_v12, %v883_v32 }
 0x4b7   :  { %v899_v13 = vpop.eup %898  ;;  %908 = vrcp.f32 %v565_v36 }
 0x4b8   :  { %v574_v15 = vmul.f32 %v899_v13, %v885_v38 }
 0x4b9   :  { %v901_v49 = vpop.eup %900 }
 0x4ba   :  { %v580_v16 = vpack.c.bf16 %v574_v15, %v573_v14  ;;  %v575_v18 = vmul.f32 %v901_v49, %v887_v41 }
 0x4bb   :  { %v903_v17 = vpop.eup %902 }
 0x4bc   :  { %v576_v19 = vmul.f32 %v903_v17, %v889_v43  ;;  %828 = vmatprep.mubr.msk.bf16.mxu0 %vm210_vm1, %v580_v16 }
 0x4bd   :  { %v905_v20 = vpop.eup %904 }
 0x4be   :  { %v581_v47 = vpack.c.bf16 %v576_v19, %v575_v18  ;;  %v577_v53 = vmul.f32 %v905_v20, %v891_v45 }
 0x4bf   :  { %v907_v21 = vpop.eup %906 }
 0x4c0   :  { %829 = vmatmul.mubr.msk.bf16.vlgmr.msra.gmra.mrb[8].mxu0 %vm210_vm1, %v581_v47  ;;  %v578_v22 = vmul.f32 %v907_v21, %v893_v48 }
 0x4c1   :  { %v909_v23 = vpop.eup %908 }
 0x4c2   :  { %v582_v24 = vpack.c.bf16 %v578_v22, %v577_v53  ;;  %v579_v25 = vmul.f32 %v909_v23, %v895_v51 }
 0x4c4   :  { %832 = vmatprep.mubr.msk.bf16.mxu0 %vm210_vm1, %v582_v24  ;;  %v583_v27 = vpack.c.bf16 %v579_v25, %v579_v25 }
 0x4c8   :  { %833 = vmatmul.mubr.msk.bf16.gmra.mrb[12].mxu0 %vm210_vm1, %v583_v27 }
 0x593   :  { %v830_v28 = vpop.f32.mrb[8].mxu0 }
 0x594   :  { %674 = vrot.lane.b32.xlu1 %v830_v28, %s1034_s3  ;;  %v633_v31 = vpop.f32.mrb[9].mxu0 }
 0x595   :  { %670 = vrot.lane.b32.xlu0 %v633_v31, %s1034_s3  ;;  %v831_v26 = vpop.f32.mrb[10].mxu0 }
 0x596   :  { %v636_v29 = vpop.f32.mrb[11].mxu0 }
 0x598   :  { %676 = vrot.lane.b32.xlu1 %v831_v26, %s1034_s3 }
 0x59b   :  { %v834_v30 = vpop.f32.mrb[12].mxu0 }
 0x59c   :  { %672 = vrot.lane.b32.xlu1 %v636_v29, %s1034_s3  ;;  %v649_v32 = vpop.f32.mrb[13].mxu0 }
 0x59d   :  { %678 = vrot.lane.b32.xlu0 %v649_v32, %s1034_s3  ;;  %v835_v35 = vpop.f32.mrb[14].mxu0 }
 0x59e   :  { %v652_v37 = vpop.f32.mrb[15].mxu0 }
 0x5a0   :  { %680 = vrot.lane.b32.xlu1 %v652_v37, %s1034_s3 }
 0x5a1   :  { %682 = vrot.lane.b32.xlu0 %v834_v30, %s1034_s3 }
 0x606   :  { %v675_v38 = vpop.permute.xlu1 %674 }
 0x607   :  { %v693_v40 = vsel %vm121_vm0, %v1224_v52, %v675_v38  ;;  %v671_v41 = vpop.permute.xlu0 %670 }
 0x608   :  { %700 = vst [vmem:[#allocation10 + $0x10] sm:$0xff] %v693_v40  ;;  %v691_v42 = vsel %vm121_vm0, %v1226_v54, %v671_v41 }
 0x609   :  { %698 = vst [vmem:[#allocation10] sm:$0xff] %v691_v42 }
 0x60a   :  { %v677_v43 = vpop.permute.xlu1 %676 }
 0x60b   :  { %v694_v44 = vsel %vm121_vm0, %v1228_v55, %v677_v43 }
 0x60c   :  { %701 = vst [vmem:[#allocation10 + $0x18] sm:$0xff] %v694_v44 }
 0x60e   :  { %v673_v45 = vpop.permute.xlu1 %672 }
 0x60f   :  { %v692_v46 = vsel %vm121_vm0, %v1230_v56, %v673_v45  ;;  %v679_v48 = vpop.permute.xlu0 %678 }
 0x610   :  { %699 = vst [vmem:[#allocation10 + $0x8] sm:$0xff] %v692_v46  ;;  %v695_v52 = vsel %vm121_vm0, %v1234_v58, %v679_v48 }
 0x611   :  { %702 = vst [vmem:[#allocation10 + $0x20] sm:$0xff] %v695_v52 }
 0x612   :  { %v681_v50 = vpop.permute.xlu1 %680 }
 0x613   :  { %v696_v54 = vsel %vm121_vm0, %v1236_v60, %v681_v50  ;;  %v683_v51 = vpop.permute.xlu0 %682 }
 0x614   :  { %703 = vst [vmem:[#allocation10 + $0x28] sm:$0xff] %v696_v54  ;;  %v697_v55 = vsel %vm121_vm0, %v1232_v57, %v683_v51 }
 0x615   :  { %704 = vst [vmem:[#allocation10 + $0x30] sm:$0xff] %v697_v55 }
 0x616   :  { %1009 = shalt.err (!%p1006_p8)
}
 0x617   :  { %s1010_s16 = scalar_lea.hbm %s1298_s4, 896 }
 0x618   :  { %p1011_p9 = scmp.ne.s32.totalorder %s1298_s4, %s1010_s16  ;;  %p1014_p10 = scmp.lt.u32.totalorder %s1010_s16, %s1298_s4 }
 0x61a   :  { %p1016_p11 = pnand %p1014_p10, %p1011_p9 }
 0x61c   :  { %1019 = shalt.err (!%p1016_p11)
}
 0x61d   :  { %716 = dma.vmem_to_hbm [thread:$0]  %s711_s1, 896, %s1298_s4, [#allocation4], %s1030_s27, %s1030_s27, %s1031_s28  }
 0x61e   :  { %1026 = dma.done.wait [#allocation4], 896  }
 0x61f   :  { %1027 = vsyncadd [#allocation4], 4294966400 }
 0x620   :  { %720 = vsyncpa [#allocation3], 1 }
 0x621   :  { %721 = vsyncpa [#allocation6], 1 }
 0x622   :  { %722 = vsyncpa [#allocation9], 1 }
 0x623   :  { %723 = vsyncpa [#allocation4], 1 }

</bundles_post_ra>
